<compile_context>
chip_gen: v7x
topology: tpu7x:2x2x1
jax: 0.10.0
libtpu: 0.0.40
codegen_flags: <defaults>
</compile_context>

<pallas_src>
import jax
import jax.numpy as jnp
from jax.experimental import pallas as pl
from jax.experimental.pallas import tpu as pltpu


_VMEM_SPEC = pl.BlockSpec(memory_space=pltpu.MemorySpace.VMEM)


def _silu(x):
    return x * jax.nn.sigmoid(x)          # f32 SiLU (EUP sigmoid, VPU mul)


# ----------------------------------------------------------------------------
# Fused kernel: one-hot MXU table gather (+ optional lerp) -> Linear -> SiLU
#               -> Linear -> SiLU.
# ----------------------------------------------------------------------------
def _make_kernel(max_steps):
    max_idx = float(max_steps - 1)

    def kernel(t_ref,                       # (B, 1)   f32   diffusion step (int steps are exact in f32)
               table_ref,                   # (Tp, 128) bf16 padded sin/cos embedding table
               w1_ref, b1_ref,              # (128, 512), (1, 512) bf16
               w2_ref, b2_ref,              # (512, 512), (1, 512) bf16
               o_ref):                      # (B, 512) f32
        B = t_ref.shape[0]
        T_pad = table_ref.shape[0]

        # --- floor / ceil / frac (covers both int and float step paths) ------
        t = t_ref[...]                                  # (B, 1) f32
        low_f = jnp.floor(t)
        frac = t - low_f                                # == 0 exactly for integer steps
        low = jnp.clip(low_f, 0.0, max_idx).astype(jnp.int32)     # (B, 1)
        high = jnp.clip(jnp.ceil(t), 0.0, max_idx).astype(jnp.int32)

        # --- one-hot MXU gather of the embedding rows -------------------------
        col = jax.lax.broadcasted_iota(jnp.int32, (B, T_pad), 1)   # (B, Tp)
        oh_low = jnp.where(col == low, 1.0, 0.0).astype(jnp.bfloat16)
        oh_high = jnp.where(col == high, 1.0, 0.0).astype(jnp.bfloat16)

        table = table_ref[...]                                     # (Tp, 128) bf16
        x_low = jnp.dot(oh_low, table, preferred_element_type=jnp.float32)
        x_high = jnp.dot(oh_high, table, preferred_element_type=jnp.float32)
        x = x_low + (x_high - x_low) * frac                        # (B, 128) f32

        # --- projection1 -> SiLU -> projection2 -> SiLU ----------------------
        h = jnp.dot(x.astype(jnp.bfloat16), w1_ref[...],
                    preferred_element_type=jnp.float32)
        h = _silu(h + b1_ref[...].astype(jnp.float32))

        y = jnp.dot(h.astype(jnp.bfloat16), w2_ref[...],
                    preferred_element_type=jnp.float32)
        y = _silu(y + b2_ref[...].astype(jnp.float32))

        o_ref[...] = y.astype(o_ref.dtype)

    return kernel


def _run(t, table_k, w1, b1, w2, b2, *, max_steps):
    B = t.shape[0]
    return pl.pallas_call(
        _make_kernel(max_steps),
        out_shape=jax.ShapeDtypeStruct((B, 512), jnp.float32),
        in_specs=[_VMEM_SPEC] * 6,      # whole-array VMEM residency, no double-buffering
        out_specs=_VMEM_SPEC,
    )(t, table_k, w1, b1, w2, b2)


# ----------------------------------------------------------------------------
# Module-equivalent construction & wrapper
# ----------------------------------------------------------------------------
def build_embedding(max_steps):
    # table[t, d] = sin/cos(t * 10 ** (d * 4 / 63)),  shape (max_steps, 128)
    steps = jnp.arange(max_steps, dtype=jnp.float32)[:, None]
    dims = jnp.arange(64, dtype=jnp.float32)[None, :]
    table = steps * 10.0 ** (dims * 4.0 / 63.0)
    return jnp.concatenate([jnp.sin(table), jnp.cos(table)], axis=1)


def init_params(key):
    # torch.nn.Linear default init (U[-1/sqrt(in), 1/sqrt(in)]), stored bf16.
    k1, k2, k3, k4 = jax.random.split(key, 4)
    lim1 = 1.0 / jnp.sqrt(128.0)
    lim2 = 1.0 / jnp.sqrt(512.0)
    w1 = jax.random.uniform(k1, (128, 512), jnp.float32, -lim1, lim1).astype(jnp.bfloat16)
    b1 = jax.random.uniform(k2, (1, 512), jnp.float32, -lim1, lim1).astype(jnp.bfloat16)
    w2 = jax.random.uniform(k3, (512, 512), jnp.float32, -lim2, lim2).astype(jnp.bfloat16)
    b2 = jax.random.uniform(k4, (1, 512), jnp.float32, -lim2, lim2).astype(jnp.bfloat16)
    return w1, b1, w2, b2


def make_diffusion_embedding(max_steps, params, table=None):
    """Returns forward(diffusion_step) -> (B, 512) f32, matching the PyTorch module."""
    if table is None:
        table = build_embedding(max_steps)
    # One-time prep: bf16 storage + zero-pad rows to a sublane-tile multiple so the
    # one-hot matmul contracts over a tile-aligned K (padding rows are never selected
    # because indices are clamped to max_steps-1, and they are zero anyway).
    t_pad = ((max_steps + 15) // 16) * 16
    table_k = jnp.pad(table, ((0, t_pad - max_steps), (0, 0))).astype(jnp.bfloat16)
    w1, b1, w2, b2 = params

    def forward(diffusion_step):
        # Integer and float steps share one kernel: integer steps become exact f32
        # values with frac == 0, reproducing plain table lookup.
        t = diffusion_step.astype(jnp.float32).reshape(-1, 1)
        return _run(t, table_k, w1, b1, w2, b2, max_steps=max_steps)

    return forward


# ----------------------------------------------------------------------------
# Pure-JAX reference (f32 math, bf16-stored weights upcast, f32 table)
# ----------------------------------------------------------------------------
def _reference_forward(diffusion_step, table, params):
    w1, b1, w2, b2 = (p.astype(jnp.float32) for p in params)
    T = table.shape[0]
    if jnp.issubdtype(diffusion_step.dtype, jnp.integer):
        x = table[diffusion_step]
    else:
        t = diffusion_step
        low_f = jnp.floor(t)
        low = jnp.clip(low_f, 0, T - 1).astype(jnp.int32)
        high = jnp.clip(jnp.ceil(t), 0, T - 1).astype(jnp.int32)
        x = table[low] + (table[high] - table[low]) * (t - low_f)[:, None]
    h = x @ w1 + b1
    h = h * jax.nn.sigmoid(h)
    y = h @ w2 + b2
    return y * jax.nn.sigmoid(y)


if __name__ == "__main__":
    max_steps = 50
    batch = 8

    key = jax.random.PRNGKey(0)
    kp, ks, kf = jax.random.split(key, 3)
    params = init_params(kp)
    table = build_embedding(max_steps)
    forward = make_diffusion_embedding(max_steps, params, table)

    # Integer diffusion steps (plain table-lookup path).
    steps_int = jax.random.randint(ks, (batch,), 0, max_steps, dtype=jnp.int32)
    out_int = jax.block_until_ready(forward(steps_int))
    ref_int = _reference_forward(steps_int, table, params)
    assert out_int.shape == (batch, 512)
    assert jnp.allclose(out_int, ref_int, atol=3e-2, rtol=3e-2), (
        float(jnp.max(jnp.abs(out_int - ref_int))))

    # Float diffusion steps (linear-interpolation path).
    steps_float = jax.random.uniform(kf, (batch,), jnp.float32, 0.0, max_steps - 1.0)
    out_f = jax.block_until_ready(forward(steps_float))
    ref_f = _reference_forward(steps_float, table, params)
    assert out_f.shape == (batch, 512)
    assert jnp.allclose(out_f, ref_f, atol=3e-2, rtol=3e-2), (
        float(jnp.max(jnp.abs(out_f - ref_f))))

    print("KERNEL_OK")
</pallas_src>

<mosaic_0001>
module attributes {stable_mosaic.version = 11 : i64} {
  func.func @kernel(%arg0: memref<8x1xf32, #tpu.memory_space<vmem>>, %arg1: memref<64x128xbf16, #tpu.memory_space<vmem>>, %arg2: memref<128x512xbf16, #tpu.memory_space<vmem>>, %arg3: memref<1x512xbf16, #tpu.memory_space<vmem>>, %arg4: memref<512x512xbf16, #tpu.memory_space<vmem>>, %arg5: memref<1x512xbf16, #tpu.memory_space<vmem>>, %arg6: memref<8x512xf32, #tpu.memory_space<vmem>>) attributes {dimension_semantics = [], scalar_prefetch = 0 : i64, scratch_operands = 0 : i64, tpu.core_type = #tpu.core_type<tc>} {
    %c0 = arith.constant 0 : index
    %c0_0 = arith.constant 0 : index
    %0 = vector.load %arg0[%c0, %c0_0] : memref<8x1xf32, #tpu.memory_space<vmem>>, vector<8x1xf32>
    %1 = math.floor %0 : vector<8x1xf32>
    %2 = arith.subf %0, %1 : vector<8x1xf32>
    %cst = arith.constant 0.000000e+00 : f32
    %cst_1 = arith.constant 4.900000e+01 : f32
    %3 = vector.broadcast %cst : f32 to vector<8x1xf32>
    %4 = arith.maximumf %3, %1 : vector<8x1xf32>
    %5 = vector.broadcast %cst_1 : f32 to vector<8x1xf32>
    %6 = arith.minimumf %5, %4 : vector<8x1xf32>
    %7 = arith.fptosi %6 : vector<8x1xf32> to vector<8x1xi32>
    %8 = math.ceil %0 : vector<8x1xf32>
    %cst_2 = arith.constant 0.000000e+00 : f32
    %cst_3 = arith.constant 4.900000e+01 : f32
    %9 = vector.broadcast %cst_2 : f32 to vector<8x1xf32>
    %10 = arith.maximumf %9, %8 : vector<8x1xf32>
    %11 = vector.broadcast %cst_3 : f32 to vector<8x1xf32>
    %12 = arith.minimumf %11, %10 : vector<8x1xf32>
    %13 = arith.fptosi %12 : vector<8x1xf32> to vector<8x1xi32>
    %14 = tpu.iota {dimensions = array<i32: 1>} : vector<8x64xi32>
    %15 = vector.broadcast %7 : vector<8x1xi32> to vector<8x64xi32>
    %16 = arith.cmpi eq, %14, %15 : vector<8x64xi32>
    %cst_4 = arith.constant 1.000000e+00 : f32
    %cst_5 = arith.constant 0.000000e+00 : f32
    %17 = vector.broadcast %cst_4 : f32 to vector<8x64xf32>
    %18 = vector.broadcast %cst_5 : f32 to vector<8x64xf32>
    %19 = arith.select %16, %17, %18 : vector<8x64xi1>, vector<8x64xf32>
    %20 = arith.truncf %19 : vector<8x64xf32> to vector<8x64xbf16>
    %21 = vector.broadcast %13 : vector<8x1xi32> to vector<8x64xi32>
    %22 = arith.cmpi eq, %14, %21 : vector<8x64xi32>
    %cst_6 = arith.constant 1.000000e+00 : f32
    %cst_7 = arith.constant 0.000000e+00 : f32
    %23 = vector.broadcast %cst_6 : f32 to vector<8x64xf32>
    %24 = vector.broadcast %cst_7 : f32 to vector<8x64xf32>
    %25 = arith.select %22, %23, %24 : vector<8x64xi1>, vector<8x64xf32>
    %26 = arith.truncf %25 : vector<8x64xf32> to vector<8x64xbf16>
    %c0_8 = arith.constant 0 : index
    %c0_9 = arith.constant 0 : index
    %27 = vector.load %arg1[%c0_8, %c0_9] : memref<64x128xbf16, #tpu.memory_space<vmem>>, vector<64x128xbf16>
    %cst_10 = arith.constant dense<0.000000e+00> : vector<8x128xf32>
    %28 = tpu.matmul %20, %27, %cst_10 {dimension_numbers = #tpu.dot_dimension_numbers<[1], [0], [0], [1], [0, 0, 1, 1], [], []>} : vector<8x64xbf16>, vector<64x128xbf16>, vector<8x128xf32> -> vector<8x128xf32>
    %cst_11 = arith.constant dense<0.000000e+00> : vector<8x128xf32>
    %29 = tpu.matmul %26, %27, %cst_11 {dimension_numbers = #tpu.dot_dimension_numbers<[1], [0], [0], [1], [0, 0, 1, 1], [], []>} : vector<8x64xbf16>, vector<64x128xbf16>, vector<8x128xf32> -> vector<8x128xf32>
    %30 = arith.subf %29, %28 : vector<8x128xf32>
    %31 = vector.broadcast %2 : vector<8x1xf32> to vector<8x128xf32>
    %32 = arith.mulf %30, %31 : vector<8x128xf32>
    %33 = arith.addf %28, %32 : vector<8x128xf32>
    %34 = arith.truncf %33 : vector<8x128xf32> to vector<8x128xbf16>
    %c0_12 = arith.constant 0 : index
    %c0_13 = arith.constant 0 : index
    %35 = vector.load %arg2[%c0_12, %c0_13] : memref<128x512xbf16, #tpu.memory_space<vmem>>, vector<128x512xbf16>
    %cst_14 = arith.constant dense<0.000000e+00> : vector<8x512xf32>
    %36 = tpu.matmul %34, %35, %cst_14 {dimension_numbers = #tpu.dot_dimension_numbers<[1], [0], [0], [1], [0, 0, 1, 1], [], []>} : vector<8x128xbf16>, vector<128x512xbf16>, vector<8x512xf32> -> vector<8x512xf32>
    %c0_15 = arith.constant 0 : index
    %c0_16 = arith.constant 0 : index
    %37 = vector.load %arg3[%c0_15, %c0_16] : memref<1x512xbf16, #tpu.memory_space<vmem>>, vector<1x512xbf16>
    %38 = arith.extf %37 : vector<1x512xbf16> to vector<1x512xf32>
    %39 = vector.broadcast %38 : vector<1x512xf32> to vector<8x512xf32>
    %40 = arith.addf %36, %39 : vector<8x512xf32>
    %41 = arith.negf %40 : vector<8x512xf32>
    %42 = math.exp %41 : vector<8x512xf32>
    %cst_17 = arith.constant 1.000000e+00 : f32
    %43 = vector.broadcast %cst_17 : f32 to vector<8x512xf32>
    %44 = arith.addf %43, %42 : vector<8x512xf32>
    %45 = arith.divf %43, %44 : vector<8x512xf32>
    %46 = arith.mulf %40, %45 : vector<8x512xf32>
    %47 = arith.truncf %46 : vector<8x512xf32> to vector<8x512xbf16>
    %c0_18 = arith.constant 0 : index
    %c0_19 = arith.constant 0 : index
    %48 = vector.load %arg4[%c0_18, %c0_19] : memref<512x512xbf16, #tpu.memory_space<vmem>>, vector<512x512xbf16>
    %cst_20 = arith.constant dense<0.000000e+00> : vector<8x512xf32>
    %49 = tpu.matmul %47, %48, %cst_20 {dimension_numbers = #tpu.dot_dimension_numbers<[1], [0], [0], [1], [0, 0, 1, 1], [], []>} : vector<8x512xbf16>, vector<512x512xbf16>, vector<8x512xf32> -> vector<8x512xf32>
    %c0_21 = arith.constant 0 : index
    %c0_22 = arith.constant 0 : index
    %50 = vector.load %arg5[%c0_21, %c0_22] : memref<1x512xbf16, #tpu.memory_space<vmem>>, vector<1x512xbf16>
    %51 = arith.extf %50 : vector<1x512xbf16> to vector<1x512xf32>
    %52 = vector.broadcast %51 : vector<1x512xf32> to vector<8x512xf32>
    %53 = arith.addf %49, %52 : vector<8x512xf32>
    %54 = arith.negf %53 : vector<8x512xf32>
    %55 = math.exp %54 : vector<8x512xf32>
    %cst_23 = arith.constant 1.000000e+00 : f32
    %56 = vector.broadcast %cst_23 : f32 to vector<8x512xf32>
    %57 = arith.addf %56, %55 : vector<8x512xf32>
    %58 = arith.divf %56, %57 : vector<8x512xf32>
    %59 = arith.mulf %53, %58 : vector<8x512xf32>
    %c0_24 = arith.constant 0 : index
    %c0_25 = arith.constant 0 : index
    %60 = vector.load %arg6[%c0_24, %c0_25] : memref<8x512xf32, #tpu.memory_space<vmem>>, vector<8x512xf32>
    tpu.vector_store %arg6[%c0_24, %c0_25], %59 {strides = array<i32>} : memref<8x512xf32, #tpu.memory_space<vmem>>, vector<8x512xf32>,
    return
  }
}

</mosaic_0001>

<bundles_post_ra>
// kernel: tpu_custom_call.1
= control target key start
LH: loop header
LB: loop body
LE: loop exit
PB: predicated region body
PF: predicated region fallthrough
CT: control target
= control target key end

     0   :  { %11 = vsyncpa [#allocation3], 0  ;;  %s2349_s0 = inlined_call_operand.vmem [shape: f32[8,1], index: 0, kind: input, shape index: {}]   ;;  %s2350_s1 = inlined_call_operand.hbm [shape: bf16[64,128], index: 1, kind: input, shape index: {}]   ;;  %s2351_s2 = inlined_call_operand.hbm [shape: bf16[128,512], index: 2, kind: input, shape index: {}]   ;;  %s2352_s3 = inlined_call_operand.vmem [shape: bf16[1,512], index: 3, kind: input, shape index: {}]   ;;  %s2353_s4 = inlined_call_operand.hbm [shape: bf16[512,512], index: 4, kind: input, shape index: {}]   ;;  %s2354_s5 = inlined_call_operand.vmem [shape: bf16[1,512], index: 5, kind: input, shape index: {}]   ;;  %s2355_s6 = inlined_call_operand.hbm [shape: f32[8,512], index: 6, kind: output, shape index: {}]  }
   0x1   :  { %12 = vsyncpa [#allocation6], 0 }
   0x2   :  { %13 = vsyncpa [#allocation4], 0  ;;  %s2189_s21 = smov [#allocation5]   ;;  %s2095_s25 = scalar_lea.hbm %s2351_s2, 4096 }
   0x3   :  { %s33_s22 = sshll.u32 %s2189_s21, 4  ;;  %p2096_p0 = scmp.ne.s32.totalorder %s2351_s2, %s2095_s25  ;;  %s34_s22 = int_to_ptr.vmem [resolvable:$true] %s33_s22 }
   0x4   :  { %p2099_p1 = scmp.lt.u32.totalorder %s2095_s25, %s2351_s2 }
   0x6   :  { %p2101_p2 = pnand %p2099_p1, %p2096_p0 }
   0x8   :  { %2104 = shalt.err (!%p2101_p2)
}
   0x9   :  { %s2105_s30 = scalar_lea.vmem %s34_s22, 4096  ;;  %p2110_p4 = scmp.lt.s32.totalorder %s34_s22, %s34_s22 }
   0xa   :  { %p2106_p3 = scmp.ne.s32.totalorder %s34_s22, %s2105_s30  ;;  %p2111_p5 = scmp.lt.s32.totalorder %s2105_s30, %s2105_s30 }
   0xc   :  { %p2112_p6 = por %p2111_p5, %p2110_p4 }
   0xe   :  { %p2113_p7 = pnand %p2112_p6, %p2106_p3 }
  0x10   :  { %2116 = shalt.err (!%p2113_p7)
}
  0x11   :  { %s2190_s7 = smov 256   ;;  %s2191_s8 = smov 16  }
  0x12   :  { %39 = dma.hbm_to_vmem [thread:$0]  %s2351_s2, 4096, %s34_s22, [#allocation6], %s2190_s7, %s2190_s7, %s2191_s8  }
  0x13   :  { %s2192_s11 = smov [#allocation2]   ;;  %s2117_s15 = scalar_lea.hbm %s2350_s1, 512 }
  0x14   :  { %s21_s12 = sshll.u32 %s2192_s11, 4  ;;  %p2118_p8 = scmp.ne.s32.totalorder %s2350_s1, %s2117_s15  ;;  %s22_s12 = int_to_ptr.vmem [resolvable:$true] %s21_s12 }
  0x15   :  { %p2121_p9 = scmp.lt.u32.totalorder %s2117_s15, %s2350_s1 }
  0x17   :  { %p2123_p10 = pnand %p2121_p9, %p2118_p8 }
  0x19   :  { %2126 = shalt.err (!%p2123_p10)
}
  0x1a   :  { %s2127_s20 = scalar_lea.vmem %s22_s12, 512  ;;  %p2132_p12 = scmp.lt.s32.totalorder %s22_s12, %s22_s12 }
  0x1b   :  { %p2128_p11 = scmp.ne.s32.totalorder %s22_s12, %s2127_s20  ;;  %p2133_p13 = scmp.lt.s32.totalorder %s2127_s20, %s2127_s20 }
  0x1d   :  { %p2134_p0 = por %p2133_p13, %p2132_p12 }
  0x1f   :  { %p2135_p1 = pnand %p2134_p0, %p2128_p11 }
  0x21   :  { %2138 = shalt.err (!%p2135_p1)
}
  0x22   :  { %s2193_s2 = smov 64   ;;  %s2194_s21 = smov 4  }
  0x23   :  { %27 = dma.hbm_to_vmem [thread:$0]  %s2350_s1, 512, %s22_s12, [#allocation3], %s2193_s2, %s2193_s2, %s2194_s21  }
  0x24   :  { %s2195_s24 = smov [#allocation7]   ;;  %s2139_s28 = scalar_lea.hbm %s2353_s4, 16384 }
  0x25   :  { %s47_s25 = sshll.u32 %s2195_s24, 4  ;;  %p2140_p2 = scmp.ne.s32.totalorder %s2353_s4, %s2139_s28  ;;  %s48_s25 = int_to_ptr.vmem [resolvable:$true] %s47_s25 }
  0x26   :  { %p2143_p3 = scmp.lt.u32.totalorder %s2139_s28, %s2353_s4 }
  0x28   :  { %p2145_p4 = pnand %p2143_p3, %p2140_p2 }
  0x2a   :  { %2148 = shalt.err (!%p2145_p4)
}
  0x2b   :  { %s2149_s11 = scalar_lea.vmem %s48_s25, 16384  ;;  %p2154_p6 = scmp.lt.s32.totalorder %s48_s25, %s48_s25 }
  0x2c   :  { %p2150_p5 = scmp.ne.s32.totalorder %s48_s25, %s2149_s11  ;;  %p2155_p7 = scmp.lt.s32.totalorder %s2149_s11, %s2149_s11 }
  0x2e   :  { %p2156_p8 = por %p2155_p7, %p2154_p6 }
  0x30   :  { %p2157_p9 = pnand %p2156_p8, %p2150_p5 }
  0x32   :  { %2160 = shalt.err (!%p2157_p9)
}
  0x33   :  { %53 = dma.hbm_to_vmem [thread:$0]  %s2353_s4, 16384, %s48_s25, [#allocation6], %s2190_s7, %s2190_s7, %s2191_s8  }
  0x34   :  { %2183 = dma.done.wait [#allocation3], 512  }
  0x35   :  { %2184 = vsyncadd [#allocation3], 4294966784 }
  0x36   :  { %2185 = dma.done.wait [#allocation6], 20480  }
  0x37   :  { %2186 = vsyncadd [#allocation6], 4294946816  ;;  %v2196_v0 = vmov 0   ;;  %v2197_v1 = vmov 0.0   ;;  %v66_v2 = vld [vmem:[%s2349_s0] sm:$0xff]  ;;  %v1820_v8 = vld [vmem:[#allocation2 + $0x8] sm:$0xff]   ;;  %v76_v20 = vlaneseq }
  0x38   :  { %1817 = vset.pattern.permute.xlu0 %v2196_v0  ;;  %1766 = vmatprep.subr.bf16.mxu0 %v2197_v1  ;;  %v67_v3 = vfloor.f32 %v66_v2  ;;  %v72_v4 = vceil.f32 %v66_v2  ;;  %v1819_v5 = vld [vmem:[#allocation2] sm:$0xff]   ;;  %v1821_v11 = vld [vmem:[#allocation2 + $0x10] sm:$0xff]   ;;  %v1822_v15 = vld [vmem:[#allocation2 + $0x18] sm:$0xff]   ;;  %vm2198_vm0 = vmmov 0   ;;  %vm122_vm2 = vcmask 523264  }
  0x39   :  { %1778 = vmatprep.subr.bf16.mxu1 %v2197_v1  ;;  %1818 = vset.pattern.permute.xlu1 %v2196_v0  ;;  %v1825_v18 = vld [vmem:[#allocation5 + $0x4] ss:$16 sps:$4 sm:$0xff]   ;;  %v1828_v19 = vld [vmem:[#allocation5 + $0xc] ss:$16 sps:$4 sm:$0xff]   ;;  %v77_v21 = vand.u32 127, %v76_v20 }
  0x3a   :  { %v69_v6 = vmax.f32 %v67_v3, 0.0  ;;  %v73_v7 = vmax.f32 %v72_v4, 0.0  ;;  %1767 = vmatpush3.bf16.msra.mxu0 %v1819_v5  ;;  %1779 = vmatpush3.bf16.msra.mxu1 %v1819_v5  ;;  %v68_v17 = vsub.f32 %v66_v2, %v67_v3  ;;  %v1823_v24 = vld [vmem:[#allocation5] ss:$16 sps:$4 sm:$0xff]   ;;  %v1831_v26 = vld [vmem:[#allocation5 + $0x24] ss:$16 sps:$4 sm:$0xff]  }
  0x3b   :  { %1768 = vmatprep.subr.bf16.mxu0 %v2197_v1  ;;  %1780 = vmatprep.subr.bf16.mxu1 %v2197_v1  ;;  %v1826_v29 = vld [vmem:[#allocation5 + $0x8] ss:$16 sps:$4 sm:$0xff]   ;;  %v1829_v30 = vld [vmem:[#allocation5 + $0x20] ss:$16 sps:$4 sm:$0xff]   ;;  %v1834_v32 = vld [vmem:[#allocation5 + $0x2c] ss:$16 sps:$4 sm:$0xff]  }
  0x3c   :  { %v70_v9 = vmin.f32 %v69_v6, 49.0  ;;  %v74_v10 = vmin.f32 %v73_v7, 49.0  ;;  %1774 = vmatprep.mubr.msk.bf16.mxu0 %vm2198_vm0, %v2197_v1  ;;  %1786 = vmatprep.mubr.msk.bf16.mxu1 %vm2198_vm0, %v2197_v1  ;;  %v1837_v33 = vld [vmem:[#allocation5 + $0x44] ss:$16 sps:$4 sm:$0xff]   ;;  %v1832_v34 = vld [vmem:[#allocation5 + $0x28] ss:$16 sps:$4 sm:$0xff]  }
  0x3d   :  { %212 = vperm.xlu1 %1818, %v68_v17   ;;  %v1835_v35 = vld [vmem:[#allocation5 + $0x40] ss:$16 sps:$4 sm:$0xff]   ;;  %v1840_v36 = vld [vmem:[#allocation5 + $0x4c] ss:$16 sps:$4 sm:$0xff]   ;;  %v1843_v37 = vld [vmem:[#allocation5 + $0x64] ss:$16 sps:$4 sm:$0xff]  }
  0x3e   :  { %v1802_v12 = vtrunc.f32 %v70_v9  ;;  %v1804_v13 = vtrunc.f32 %v74_v10  ;;  %1769 = vmatpush3.bf16.msra.mxu0 %v1820_v8  ;;  %1781 = vmatpush3.bf16.msra.mxu1 %v1820_v8  ;;  %v1838_v38 = vld [vmem:[#allocation5 + $0x48] ss:$16 sps:$4 sm:$0xff]   ;;  %v1841_v39 = vld [vmem:[#allocation5 + $0x60] ss:$16 sps:$4 sm:$0xff]   ;;  %v1846_v40 = vld [vmem:[#allocation5 + $0x6c] ss:$16 sps:$4 sm:$0xff]  }
  0x3f   :  { %1770 = vmatprep.subr.bf16.mxu0 %v2197_v1  ;;  %1782 = vmatprep.subr.bf16.mxu1 %v2197_v1  ;;  %v1849_v41 = vld [vmem:[#allocation5 + $0x84] ss:$16 sps:$4 sm:$0xff]   ;;  %v1844_v42 = vld [vmem:[#allocation5 + $0x68] ss:$16 sps:$4 sm:$0xff]   ;;  %v1847_v43 = vld [vmem:[#allocation5 + $0x80] ss:$16 sps:$4 sm:$0xff]  }
  0x40   :  { %v1803_v14 = vcvt.f32.s32 %v1802_v12  ;;  %v1805_v16 = vcvt.f32.s32 %v1804_v13  ;;  %v1852_v44 = vld [vmem:[#allocation5 + $0x8c] ss:$16 sps:$4 sm:$0xff]   ;;  %v1850_v45 = vld [vmem:[#allocation5 + $0x88] ss:$16 sps:$4 sm:$0xff]   ;;  %v1855_v46 = vld [vmem:[#allocation5 + $0xa4] ss:$16 sps:$4 sm:$0xff]  }
  0x41   :  { %v1858_v47 = vld [vmem:[#allocation5 + $0xac] ss:$16 sps:$4 sm:$0xff]   ;;  %v1853_v48 = vld [vmem:[#allocation5 + $0xa0] ss:$16 sps:$4 sm:$0xff]   ;;  %v1856_v49 = vld [vmem:[#allocation5 + $0xa8] ss:$16 sps:$4 sm:$0xff]  }
  0x42   :  { %79 = vperm.xlu0 %1817, %v1803_v14   ;;  %1771 = vmatpush3.bf16.msra.mxu0 %v1821_v11  ;;  %v1861_v50 = vld [vmem:[#allocation5 + $0xc4] ss:$16 sps:$4 sm:$0xff]   ;;  %v1864_v51 = vld [vmem:[#allocation5 + $0xcc] ss:$16 sps:$4 sm:$0xff]   ;;  %v1859_v52 = vld [vmem:[#allocation5 + $0xc0] ss:$16 sps:$4 sm:$0xff]  }
  0x43   :  { %1772 = vmatprep.subr.bf16.mxu0 %v2197_v1  ;;  %1783 = vmatpush3.bf16.msra.mxu1 %v1821_v11  ;;  %v1862_v53 = vld [vmem:[#allocation5 + $0xc8] ss:$16 sps:$4 sm:$0xff]   ;;  %v1867_v54 = vld [vmem:[#allocation5 + $0xe4] ss:$16 sps:$4 sm:$0xff]   ;;  %v1870_v55 = vld [vmem:[#allocation5 + $0xec] ss:$16 sps:$4 sm:$0xff]  }
  0x44   :  { %1784 = vmatprep.subr.bf16.mxu1 %v2197_v1  ;;  %v1865_v56 = vld [vmem:[#allocation5 + $0xe0] ss:$16 sps:$4 sm:$0xff]   ;;  %v1868_v57 = vld [vmem:[#allocation5 + $0xe8] ss:$16 sps:$4 sm:$0xff]   ;;  %v1873_v58 = vld [vmem:[#allocation7 + $0x4] ss:$16 sps:$4 sm:$0xff]  }
  0x45   :  { %v1876_v59 = vld [vmem:[#allocation7 + $0xc] ss:$16 sps:$4 sm:$0xff]   ;;  %v1871_v8 = vld [vmem:[#allocation7] ss:$16 sps:$4 sm:$0xff]   ;;  %v1874_v9 = vld [vmem:[#allocation7 + $0x8] ss:$16 sps:$4 sm:$0xff]  }
  0x46   :  { %85 = vperm.xlu0 %1817, %v1805_v16   ;;  %1773 = vmatpush3.bf16.msra.mxu0 %v1822_v15  ;;  %v1879_v11 = vld [vmem:[#allocation7 + $0x24] ss:$16 sps:$4 sm:$0xff]   ;;  %v1882_v12 = vld [vmem:[#allocation7 + $0x2c] ss:$16 sps:$4 sm:$0xff]   ;;  %v1877_v13 = vld [vmem:[#allocation7 + $0x20] ss:$16 sps:$4 sm:$0xff]  }
  0x47   :  { %1785 = vmatpush3.bf16.msra.mxu1 %v1822_v15  ;;  %449 = vmatprep.subr.bf16.mxu0 %v1825_v18  ;;  %v1880_v14 = vld [vmem:[#allocation7 + $0x28] ss:$16 sps:$4 sm:$0xff]   ;;  %v1885_v15 = vld [vmem:[#allocation7 + $0x44] ss:$16 sps:$4 sm:$0xff]   ;;  %v1888_v16 = vld [vmem:[#allocation7 + $0x4c] ss:$16 sps:$4 sm:$0xff]  }
  0x48   :  { %490 = vmatprep.subr.bf16.mxu1 %v1828_v19  ;;  %v1883_v17 = vld [vmem:[#allocation7 + $0x40] ss:$16 sps:$4 sm:$0xff]   ;;  %v1886_v18 = vld [vmem:[#allocation7 + $0x48] ss:$16 sps:$4 sm:$0xff]   ;;  %v1891_v19 = vld [vmem:[#allocation7 + $0x64] ss:$16 sps:$4 sm:$0xff]  }
  0xc1   :  { %v80_v22 = vpop.permute.xlu0 %79 }
  0xc2   :  { %vm81_vm1 = vcmp.eq.s32.totalorder %v77_v21, %v80_v22  ;;  %v1889_v22 = vld [vmem:[#allocation7 + $0x60] ss:$16 sps:$4 sm:$0xff]  }
  0xc3   :  { %v82_v23 = vsel %vm81_vm1, 1.0, %v2197_v1 }
  0xc4   :  { %v83_v25 = vpack.c.bf16 %v82_v23, %v82_v23  ;;  %v1892_v23 = vld [vmem:[#allocation7 + $0x68] ss:$16 sps:$4 sm:$0xff]  }
  0xc5   :  { %v86_v27 = vpop.permute.xlu0 %85 }
  0xc6   :  { %vm87_vm3 = vcmp.eq.s32.totalorder %v77_v21, %v86_v27  ;;  %1775 = vmatmul.mubr.msk.bf16.vlgmr.msra.gmra.mrb[0].mxu0 %vm122_vm2, %v83_v25  ;;  %v1894_v21 = vld [vmem:[#allocation7 + $0x6c] ss:$16 sps:$4 sm:$0xff]   ;;  %v1898_v27 = vld [vmem:[#allocation7 + $0x88] ss:$16 sps:$4 sm:$0xff]  }
  0xc7   :  { %v88_v28 = vsel %vm87_vm3, 1.0, %v2197_v1  ;;  %450 = vmatpush1.bf16.msra.mxu0 %v1823_v24  ;;  %481 = vmatprep.mubr.bf16.mxu0 %v2196_v0  ;;  %v213_v1 = vpop.permute.xlu1 %212  ;;  %v1897_v24 = vld [vmem:[#allocation7 + $0x84] ss:$16 sps:$4 sm:$0xff]   ;;  %v1900_v25 = vld [vmem:[#allocation7 + $0x8c] ss:$16 sps:$4 sm:$0xff]  }
  0xc8   :  { %v89_v31 = vpack.c.bf16 %v88_v28, %v88_v28  ;;  %451 = vmatprep.subr.bf16.mxu0 %v1831_v26  ;;  %v1895_v26 = vld [vmem:[#allocation7 + $0x80] ss:$16 sps:$4 sm:$0xff]   ;;  %v1903_v28 = vld [vmem:[#allocation7 + $0xa4] ss:$16 sps:$4 sm:$0xff]  }
  0xca   :  { %1787 = vmatmul.mubr.msk.bf16.vlgmr.msra.gmra.mrb[0].mxu1 %vm122_vm2, %v89_v31  ;;  %v1904_v31 = vld [vmem:[#allocation7 + $0xa8] ss:$16 sps:$4 sm:$0xff]  }
  0xcb   :  { %491 = vmatpush1.bf16.msra.mxu1 %v1826_v29  ;;  %452 = vmatpush1.bf16.msra.mxu0 %v1829_v30  ;;  %v1906_v29 = vld [vmem:[#allocation7 + $0xac] ss:$16 sps:$4 sm:$0xff]   ;;  %v1901_v30 = vld [vmem:[#allocation7 + $0xa0] ss:$16 sps:$4 sm:$0xff]  }
  0xcc   :  { %492 = vmatprep.subr.bf16.mxu1 %v1834_v32  ;;  %453 = vmatprep.subr.bf16.mxu0 %v1837_v33  ;;  %v1909_v32 = vld [vmem:[#allocation7 + $0xc4] ss:$16 sps:$4 sm:$0xff]   ;;  %v1912_v33 = vld [vmem:[#allocation7 + $0xcc] ss:$16 sps:$4 sm:$0xff]  }
  0xcd   :  { %522 = vmatprep.mubr.bf16.mxu1 %v2196_v0 }
  0xcf   :  { %493 = vmatpush1.bf16.msra.mxu1 %v1832_v34  ;;  %454 = vmatpush1.bf16.msra.mxu0 %v1835_v35  ;;  %v1907_v34 = vld [vmem:[#allocation7 + $0xc0] ss:$16 sps:$4 sm:$0xff]   ;;  %v1910_v35 = vld [vmem:[#allocation7 + $0xc8] ss:$16 sps:$4 sm:$0xff]  }
  0xd0   :  { %494 = vmatprep.subr.bf16.mxu1 %v1840_v36  ;;  %455 = vmatprep.subr.bf16.mxu0 %v1843_v37  ;;  %v1915_v36 = vld [vmem:[#allocation7 + $0xe4] ss:$16 sps:$4 sm:$0xff]   ;;  %v1918_v37 = vld [vmem:[#allocation7 + $0xec] ss:$16 sps:$4 sm:$0xff]  }
  0xd3   :  { %495 = vmatpush1.bf16.msra.mxu1 %v1838_v38  ;;  %456 = vmatpush1.bf16.msra.mxu0 %v1841_v39  ;;  %v1913_v38 = vld [vmem:[#allocation7 + $0xe0] ss:$16 sps:$4 sm:$0xff]   ;;  %v1916_v39 = vld [vmem:[#allocation7 + $0xe8] ss:$16 sps:$4 sm:$0xff]  }
  0xd4   :  { %496 = vmatprep.subr.bf16.mxu1 %v1846_v40  ;;  %457 = vmatprep.subr.bf16.mxu0 %v1849_v41  ;;  %v1921_v40 = vld [vmem:[#allocation7 + $0x104] ss:$16 sps:$4 sm:$0xff]   ;;  %v1924_v41 = vld [vmem:[#allocation7 + $0x10c] ss:$16 sps:$4 sm:$0xff]  }
  0xd7   :  { %497 = vmatpush1.bf16.msra.mxu1 %v1844_v42  ;;  %458 = vmatpush1.bf16.msra.mxu0 %v1847_v43  ;;  %v1919_v42 = vld [vmem:[#allocation7 + $0x100] ss:$16 sps:$4 sm:$0xff]   ;;  %v1922_v43 = vld [vmem:[#allocation7 + $0x108] ss:$16 sps:$4 sm:$0xff]  }
  0xd8   :  { %498 = vmatprep.subr.bf16.mxu1 %v1852_v44  ;;  %459 = vmatprep.subr.bf16.mxu0 %v1855_v46  ;;  %v1927_v44 = vld [vmem:[#allocation7 + $0x124] ss:$16 sps:$4 sm:$0xff]   ;;  %v1925_v46 = vld [vmem:[#allocation7 + $0x120] ss:$16 sps:$4 sm:$0xff]  }
  0xdb   :  { %499 = vmatpush1.bf16.msra.mxu1 %v1850_v45  ;;  %460 = vmatpush1.bf16.msra.mxu0 %v1853_v48  ;;  %v1930_v45 = vld [vmem:[#allocation7 + $0x12c] ss:$16 sps:$4 sm:$0xff]   ;;  %v1933_v48 = vld [vmem:[#allocation7 + $0x144] ss:$16 sps:$4 sm:$0xff]  }
  0xdc   :  { %500 = vmatprep.subr.bf16.mxu1 %v1858_v47  ;;  %461 = vmatprep.subr.bf16.mxu0 %v1861_v50  ;;  %v1928_v47 = vld [vmem:[#allocation7 + $0x128] ss:$16 sps:$4 sm:$0xff]   ;;  %v1931_v50 = vld [vmem:[#allocation7 + $0x140] ss:$16 sps:$4 sm:$0xff]  }
  0xdf   :  { %501 = vmatpush1.bf16.msra.mxu1 %v1856_v49  ;;  %462 = vmatpush1.bf16.msra.mxu0 %v1859_v52  ;;  %v1936_v49 = vld [vmem:[#allocation7 + $0x14c] ss:$16 sps:$4 sm:$0xff]   ;;  %v1939_v52 = vld [vmem:[#allocation7 + $0x164] ss:$16 sps:$4 sm:$0xff]  }
  0xe0   :  { %502 = vmatprep.subr.bf16.mxu1 %v1864_v51  ;;  %463 = vmatprep.subr.bf16.mxu0 %v1867_v54  ;;  %v1934_v51 = vld [vmem:[#allocation7 + $0x148] ss:$16 sps:$4 sm:$0xff]   ;;  %v1937_v54 = vld [vmem:[#allocation7 + $0x160] ss:$16 sps:$4 sm:$0xff]  }
  0xe3   :  { %503 = vmatpush1.bf16.msra.mxu1 %v1862_v53  ;;  %464 = vmatpush1.bf16.msra.mxu0 %v1865_v56  ;;  %v1942_v53 = vld [vmem:[#allocation7 + $0x16c] ss:$16 sps:$4 sm:$0xff]   ;;  %v1945_v56 = vld [vmem:[#allocation7 + $0x184] ss:$16 sps:$4 sm:$0xff]  }
  0xe4   :  { %504 = vmatprep.subr.bf16.mxu1 %v1870_v55  ;;  %1370 = vmatprep.subr.bf16.mxu0 %v1873_v58  ;;  %v1940_v55 = vld [vmem:[#allocation7 + $0x168] ss:$16 sps:$4 sm:$0xff]   ;;  %v1943_v58 = vld [vmem:[#allocation7 + $0x180] ss:$16 sps:$4 sm:$0xff]  }
  0xe7   :  { %505 = vmatpush1.bf16.msra.mxu1 %v1868_v57  ;;  %v1948_v57 = vld [vmem:[#allocation7 + $0x18c] ss:$16 sps:$4 sm:$0xff]  }
  0xe8   :  { %1452 = vmatprep.subr.bf16.mxu1 %v1876_v59  ;;  %v1946_v59 = vld [vmem:[#allocation7 + $0x188] ss:$16 sps:$4 sm:$0xff]  }
 0x199   :  { %v160_v60 = vpop.f32.mrb[0].mxu0 }
 0x19a   :  { %v1776_v61 = vpop.f32.mrb[1].mxu0 }
 0x19b   :  { %v163_v62 = vpop.f32.mrb[2].mxu0  ;;  %v1954_v61 = vld [vmem:[#allocation7 + $0x1ac] ss:$16 sps:$4 sm:$0xff]  }
 0x19c   :  { %v1777_v63 = vpop.f32.mrb[3].mxu0  ;;  %v1949_v62 = vld [vmem:[#allocation7 + $0x1a0] ss:$16 sps:$4 sm:$0xff]  }
 0x19d   :  { %v203_v0 = vpop.f32.mrb[0].mxu1  ;;  %v1952_v63 = vld [vmem:[#allocation7 + $0x1a8] ss:$16 sps:$4 sm:$0xff]  }
 0x19e   :  { %v209_v2 = vsub.f32 %v203_v0, %v160_v60  ;;  %v1788_v3 = vpop.f32.mrb[1].mxu1  ;;  %v1957_v0 = vld [vmem:[#allocation7 + $0x1c4] ss:$16 sps:$4 sm:$0xff]  }
 0x19f   :  { %v206_v4 = vpop.f32.mrb[2].mxu1  ;;  %v1958_v3 = vld [vmem:[#allocation7 + $0x1c8] ss:$16 sps:$4 sm:$0xff]  }
 0x1a0   :  { %v215_v5 = vmul.f32 %v213_v1, %v209_v2  ;;  %v1789_v6 = vpop.f32.mrb[3].mxu1  ;;  %v1960_v1 = vld [vmem:[#allocation7 + $0x1cc] ss:$16 sps:$4 sm:$0xff]   ;;  %v1955_v2 = vld [vmem:[#allocation7 + $0x1c0] ss:$16 sps:$4 sm:$0xff]  }
 0x1a1   :  { %v1963_v4 = vld [vmem:[#allocation7 + $0x1e4] ss:$16 sps:$4 sm:$0xff]   ;;  %v1961_v6 = vld [vmem:[#allocation7 + $0x1e0] ss:$16 sps:$4 sm:$0xff]  }
 0x1a2   :  { %v216_v7 = vadd.f32 %v215_v5, %v160_v60  ;;  %v1951_v60 = vld [vmem:[#allocation7 + $0x1a4] ss:$16 sps:$4 sm:$0xff]   ;;  %v1966_v5 = vld [vmem:[#allocation7 + $0x1ec] ss:$16 sps:$4 sm:$0xff]  }
 0x1a4   :  { %v217_v10 = vpack.c.bf16 %v216_v7, %v216_v7  ;;  %v1964_v7 = vld [vmem:[#allocation7 + $0x1e8] ss:$16 sps:$4 sm:$0xff]  }
 0x1a6   :  { %482 = vmatmul.mubr.bf16.vlgmr.msra.gmra.mrb[4].mxu0 %v217_v10  ;;  %523 = vmatmul.mubr.bf16.vlgmr.msra.gmra.mrb[4].mxu1 %v217_v10  ;;  %v2288_v10 = vshrl.u32 %v76_v20, 7 }
 0x1a7   :  { %1371 = vmatpush1.bf16.msra.mxu0 %v1871_v8  ;;  %1453 = vmatpush1.bf16.msra.mxu1 %v1874_v9  ;;  %v1969_v8 = vld [vmem:[#allocation7 + $0x204] ss:$16 sps:$4 sm:$0xff]   ;;  %v1972_v9 = vld [vmem:[#allocation7 + $0x20c] ss:$16 sps:$4 sm:$0xff]  }
 0x1a8   :  { %1372 = vmatprep.subr.bf16.mxu0 %v1879_v11  ;;  %1454 = vmatprep.subr.bf16.mxu1 %v1882_v12  ;;  %v250_v11 = vld [vmem:[%s2352_s3] sm:$0xf]  ;;  %v2294_v12 = vsub.s32 0, %v2288_v10 }
 0x1ab   :  { %1373 = vmatpush1.bf16.msra.mxu0 %v1877_v13  ;;  %1455 = vmatpush1.bf16.msra.mxu1 %v1880_v14  ;;  %v2296_v13 = vunpack.c.l.bf16 %v250_v11  ;;  %v259_v14 = vsub.s32 2, %v2288_v10  ;;  %v1997_v11 = vld [vmem:[#allocation7 + $0x2a0] ss:$16 sps:$4 sm:$0xff]  }
 0x1ac   :  { %1374 = vmatprep.subr.bf16.mxu0 %v1885_v15  ;;  %1456 = vmatprep.subr.bf16.mxu1 %v1888_v16  ;;  %v267_v15 = vsub.s32 6, %v2288_v10 }
 0x1ad   :  { %v256_v16 = vrot.slane %v2296_v13, %v2294_v12  ;;  %v260_v20 = vrot.slane %v2296_v13, %v259_v14 }
 0x1af   :  { %1375 = vmatpush1.bf16.msra.mxu0 %v1883_v17  ;;  %1457 = vmatpush1.bf16.msra.mxu1 %v1886_v18  ;;  %v268_v17 = vrot.slane %v2296_v13, %v267_v15  ;;  %v276_v18 = vrot.slane %v256_v16, %v2294_v12  ;;  %v2000_v16 = vld [vmem:[#allocation7 + $0x2a8] ss:$16 sps:$4 sm:$0xff]  }
 0x1b0   :  { %1376 = vmatprep.subr.bf16.mxu0 %v1891_v19  ;;  %1458 = vmatprep.subr.bf16.mxu1 %v1894_v21  ;;  %v280_v19 = vrot.slane %v260_v20, %v2294_v12  ;;  %v2005_v20 = vld [vmem:[#allocation7 + $0x2c4] ss:$16 sps:$4 sm:$0xff]  }
 0x1b1   :  { %v288_v21 = vrot.slane %v268_v17, %v2294_v12  ;;  %v2008_v17 = vld [vmem:[#allocation7 + $0x2cc] ss:$16 sps:$4 sm:$0xff]  }
 0x1b3   :  { %1377 = vmatpush1.bf16.msra.mxu0 %v1889_v22  ;;  %1459 = vmatpush1.bf16.msra.mxu1 %v1892_v23 }
 0x1b4   :  { %1378 = vmatprep.subr.bf16.mxu0 %v1897_v24  ;;  %1460 = vmatprep.subr.bf16.mxu1 %v1900_v25 }
 0x1b7   :  { %1379 = vmatpush1.bf16.msra.mxu0 %v1895_v26  ;;  %1461 = vmatpush1.bf16.msra.mxu1 %v1898_v27 }
 0x1b8   :  { %1380 = vmatprep.subr.bf16.mxu0 %v1903_v28  ;;  %1462 = vmatprep.subr.bf16.mxu1 %v1906_v29 }
 0x1bb   :  { %1381 = vmatpush1.bf16.msra.mxu0 %v1901_v30  ;;  %1463 = vmatpush1.bf16.msra.mxu1 %v1904_v31 }
 0x1bc   :  { %1382 = vmatprep.subr.bf16.mxu0 %v1909_v32  ;;  %1464 = vmatprep.subr.bf16.mxu1 %v1912_v33 }
 0x1bf   :  { %1383 = vmatpush1.bf16.msra.mxu0 %v1907_v34  ;;  %1465 = vmatpush1.bf16.msra.mxu1 %v1910_v35 }
 0x1c0   :  { %1384 = vmatprep.subr.bf16.mxu0 %v1915_v36  ;;  %1466 = vmatprep.subr.bf16.mxu1 %v1918_v37 }
 0x1c3   :  { %1385 = vmatpush1.bf16.msra.mxu0 %v1913_v38  ;;  %1467 = vmatpush1.bf16.msra.mxu1 %v1916_v39 }
 0x1c4   :  { %1386 = vmatprep.subr.bf16.mxu0 %v1921_v40  ;;  %1468 = vmatprep.subr.bf16.mxu1 %v1924_v41 }
 0x1c7   :  { %1387 = vmatpush1.bf16.msra.mxu0 %v1919_v42  ;;  %1469 = vmatpush1.bf16.msra.mxu1 %v1922_v43 }
 0x1c8   :  { %1388 = vmatprep.subr.bf16.mxu0 %v1927_v44  ;;  %1470 = vmatprep.subr.bf16.mxu1 %v1930_v45 }
 0x1cb   :  { %1389 = vmatpush1.bf16.msra.mxu0 %v1925_v46  ;;  %1471 = vmatpush1.bf16.msra.mxu1 %v1928_v47 }
 0x1cc   :  { %1390 = vmatprep.subr.bf16.mxu0 %v1933_v48  ;;  %1472 = vmatprep.subr.bf16.mxu1 %v1936_v49  ;;  %v1967_v49 = vld [vmem:[#allocation7 + $0x200] ss:$16 sps:$4 sm:$0xff]  }
 0x1cf   :  { %1391 = vmatpush1.bf16.msra.mxu0 %v1931_v50  ;;  %1473 = vmatpush1.bf16.msra.mxu1 %v1934_v51  ;;  %v1970_v50 = vld [vmem:[#allocation7 + $0x208] ss:$16 sps:$4 sm:$0xff]  }
 0x1d0   :  { %1392 = vmatprep.subr.bf16.mxu0 %v1939_v52  ;;  %1474 = vmatprep.subr.bf16.mxu1 %v1942_v53  ;;  %v1975_v52 = vld [vmem:[#allocation7 + $0x224] ss:$16 sps:$4 sm:$0xff]   ;;  %v1978_v53 = vld [vmem:[#allocation7 + $0x22c] ss:$16 sps:$4 sm:$0xff]  }
 0x1d3   :  { %1393 = vmatpush1.bf16.msra.mxu0 %v1937_v54  ;;  %1475 = vmatpush1.bf16.msra.mxu1 %v1940_v55  ;;  %v1973_v55 = vld [vmem:[#allocation7 + $0x220] ss:$16 sps:$4 sm:$0xff]  }
 0x1d4   :  { %1394 = vmatprep.subr.bf16.mxu0 %v1945_v56  ;;  %1476 = vmatprep.subr.bf16.mxu1 %v1948_v57  ;;  %v1976_v56 = vld [vmem:[#allocation7 + $0x228] ss:$16 sps:$4 sm:$0xff]   ;;  %v1981_v57 = vld [vmem:[#allocation7 + $0x244] ss:$16 sps:$4 sm:$0xff]  }
 0x1d7   :  { %1395 = vmatpush1.bf16.msra.mxu0 %v1943_v58  ;;  %1477 = vmatpush1.bf16.msra.mxu1 %v1946_v59  ;;  %v1984_v58 = vld [vmem:[#allocation7 + $0x24c] ss:$16 sps:$4 sm:$0xff]   ;;  %v1979_v59 = vld [vmem:[#allocation7 + $0x240] ss:$16 sps:$4 sm:$0xff]  }
 0x1d8   :  { %1396 = vmatprep.subr.bf16.mxu0 %v1951_v60  ;;  %1478 = vmatprep.subr.bf16.mxu1 %v1954_v61  ;;  %v1982_v60 = vld [vmem:[#allocation7 + $0x248] ss:$16 sps:$4 sm:$0xff]   ;;  %v1987_v61 = vld [vmem:[#allocation7 + $0x264] ss:$16 sps:$4 sm:$0xff]  }
 0x1db   :  { %1397 = vmatpush1.bf16.msra.mxu0 %v1949_v62  ;;  %1479 = vmatpush1.bf16.msra.mxu1 %v1952_v63  ;;  %v1990_v62 = vld [vmem:[#allocation7 + $0x26c] ss:$16 sps:$4 sm:$0xff]   ;;  %v263_v63 = vsub.s32 4, %v2288_v10 }
 0x1dc   :  { %1398 = vmatprep.subr.bf16.mxu0 %v1957_v0  ;;  %1480 = vmatprep.subr.bf16.mxu1 %v1960_v1  ;;  %v1985_v0 = vld [vmem:[#allocation7 + $0x260] ss:$16 sps:$4 sm:$0xff]   ;;  %v1988_v1 = vld [vmem:[#allocation7 + $0x268] ss:$16 sps:$4 sm:$0xff]  }
 0x1df   :  { %1399 = vmatpush1.bf16.msra.mxu0 %v1955_v2  ;;  %1481 = vmatpush1.bf16.msra.mxu1 %v1958_v3  ;;  %v1993_v2 = vld [vmem:[#allocation7 + $0x284] ss:$16 sps:$4 sm:$0xff]   ;;  %v1996_v3 = vld [vmem:[#allocation7 + $0x28c] ss:$16 sps:$4 sm:$0xff]  }
 0x1e0   :  { %1400 = vmatprep.subr.bf16.mxu0 %v1963_v4  ;;  %1482 = vmatprep.subr.bf16.mxu1 %v1966_v5  ;;  %v264_v4 = vrot.slane %v2296_v13, %v263_v63  ;;  %v1991_v5 = vld [vmem:[#allocation7 + $0x280] ss:$16 sps:$4 sm:$0xff]  }
 0x1e3   :  { %1401 = vmatpush1.bf16.msra.mxu0 %v1961_v6  ;;  %1483 = vmatpush1.bf16.msra.mxu1 %v1964_v7  ;;  %v1994_v6 = vld [vmem:[#allocation7 + $0x288] ss:$16 sps:$4 sm:$0xff]   ;;  %v1999_v7 = vld [vmem:[#allocation7 + $0x2a4] ss:$16 sps:$4 sm:$0xff]  }
 0x1e4   :  { %1411 = vmatprep.subr.bf16.mxu0 %v1969_v8  ;;  %1493 = vmatprep.subr.bf16.mxu1 %v1972_v9  ;;  %v2002_v8 = vld [vmem:[#allocation7 + $0x2ac] ss:$16 sps:$4 sm:$0xff]   ;;  %v284_v9 = vrot.slane %v264_v4, %v2294_v12 }
 0x279   :  { %v483_v22 = vpop.f32.mrb[4].mxu0  ;;  %v2311_v23 = vpop.f32.mrb[4].mxu1 }
 0x27a   :  { %v484_v24 = vadd.f32 %v483_v22, %v276_v18  ;;  %v485_v25 = vpop.f32.mrb[5].mxu0  ;;  %v526_v26 = vpop.f32.mrb[5].mxu1  ;;  %v2319_v13 = vadd.f32 %v2311_v23, %v284_v9  ;;  %v2003_v18 = vld [vmem:[#allocation7 + $0x2c0] ss:$16 sps:$4 sm:$0xff]   ;;  %v2014_v22 = vld [vmem:[#allocation7 + $0x2ec] ss:$16 sps:$4 sm:$0xff]  }
 0x27b   :  { %v486_v27 = vadd.f32 %v485_v25, %v280_v19  ;;  %v527_v28 = vadd.f32 %v526_v26, %v288_v21  ;;  %v487_v29 = vpop.f32.mrb[6].mxu0  ;;  %v528_v30 = vpop.f32.mrb[6].mxu1  ;;  %v2006_v19 = vld [vmem:[#allocation7 + $0x2c8] ss:$16 sps:$4 sm:$0xff]   ;;  %v2011_v21 = vld [vmem:[#allocation7 + $0x2e4] ss:$16 sps:$4 sm:$0xff]  }
 0x27c   :  { %v1620_v31 = vmul.f32 -1.442695, %v484_v24  ;;  %v488_v32 = vpop.f32.mrb[7].mxu0  ;;  %v529_v33 = vpop.f32.mrb[7].mxu1  ;;  %v2009_v25 = vld [vmem:[#allocation7 + $0x2e0] ss:$16 sps:$4 sm:$0xff]  }
 0x27d   :  { %v1621_v34 = vmul.f32 -1.442695, %v486_v27  ;;  %v1623_v35 = vmul.f32 -1.442695, %v527_v28  ;;  %v2012_v26 = vld [vmem:[#allocation7 + $0x2e8] ss:$16 sps:$4 sm:$0xff]  }
 0x27e   :  { %2063 = vpow2.f32 %v1620_v31  ;;  %v2015_v23 = vld [vmem:[#allocation7 + $0x300] ss:$16 sps:$4 sm:$0xff]   ;;  %v2018_v29 = vld [vmem:[#allocation7 + $0x308] ss:$16 sps:$4 sm:$0xff]   ;;  %v2023_v30 = vld [vmem:[#allocation7 + $0x324] ss:$16 sps:$4 sm:$0xff]  }
 0x27f   :  { %2065 = vpow2.f32 %v1621_v34  ;;  %v2026_v31 = vld [vmem:[#allocation7 + $0x32c] ss:$16 sps:$4 sm:$0xff]   ;;  %v2021_v32 = vld [vmem:[#allocation7 + $0x320] ss:$16 sps:$4 sm:$0xff]   ;;  %v2024_v33 = vld [vmem:[#allocation7 + $0x328] ss:$16 sps:$4 sm:$0xff]  }
 0x280   :  { %2067 = vpow2.f32 %v1623_v35  ;;  %v2029_v34 = vld [vmem:[#allocation7 + $0x344] ss:$16 sps:$4 sm:$0xff]   ;;  %v2032_v35 = vld [vmem:[#allocation7 + $0x34c] ss:$16 sps:$4 sm:$0xff]  }
 0x288   :  { %v2064_v36 = vpop.eup %2063 }
 0x289   :  { %v543_v37 = vadd.f32 1.0, %v2064_v36  ;;  %v2066_v38 = vpop.eup %2065  ;;  %v2027_v36 = vld [vmem:[#allocation7 + $0x340] ss:$16 sps:$4 sm:$0xff]  }
 0x28a   :  { %v2068_v39 = vpop.eup %2067  ;;  %v544_v40 = vadd.f32 1.0, %v2066_v38 }
 0x28b   :  { %2069 = vrcp.f32 %v543_v37  ;;  %v546_v41 = vadd.f32 1.0, %v2068_v39  ;;  %v2030_v37 = vld [vmem:[#allocation7 + $0x348] ss:$16 sps:$4 sm:$0xff]   ;;  %v2035_v39 = vld [vmem:[#allocation7 + $0x364] ss:$16 sps:$4 sm:$0xff]  }
 0x28c   :  { %2071 = vrcp.f32 %v544_v40  ;;  %v2038_v40 = vld [vmem:[#allocation7 + $0x36c] ss:$16 sps:$4 sm:$0xff]  }
 0x28d   :  { %2073 = vrcp.f32 %v546_v41 }
 0x295   :  { %v2070_v42 = vpop.eup %2069 }
 0x296   :  { %v2072_v43 = vpop.eup %2071  ;;  %v555_v44 = vmul.f32 %v2070_v42, %v484_v24  ;;  %v1622_v24 = vmul.f32 -1.442695, %v2319_v13  ;;  %v2033_v42 = vld [vmem:[#allocation7 + $0x360] ss:$16 sps:$4 sm:$0xff]  }
 0x297   :  { %v2074_v45 = vpop.eup %2073  ;;  %v556_v46 = vmul.f32 %v2072_v43, %v486_v27  ;;  %v2017_v27 = vld [vmem:[#allocation7 + $0x304] ss:$16 sps:$4 sm:$0xff]   ;;  %v2036_v43 = vld [vmem:[#allocation7 + $0x368] ss:$16 sps:$4 sm:$0xff]  }
 0x298   :  { %v558_v47 = vmul.f32 %v2074_v45, %v527_v28  ;;  %v559_v51 = vpack.c.bf16 %v555_v44, %v555_v44  ;;  %v2020_v28 = vld [vmem:[#allocation7 + $0x30c] ss:$16 sps:$4 sm:$0xff]   ;;  %2075 = vpow2.f32 %v1622_v24  ;;  %v2041_v44 = vld [vmem:[#allocation7 + $0x384] ss:$16 sps:$4 sm:$0xff]  }
 0x299   :  { %v560_v48 = vpack.c.bf16 %v556_v46, %v556_v46  ;;  %v2044_v45 = vld [vmem:[#allocation7 + $0x38c] ss:$16 sps:$4 sm:$0xff]   ;;  %v2039_v46 = vld [vmem:[#allocation7 + $0x380] ss:$16 sps:$4 sm:$0xff]  }
 0x29a   :  { %v562_v54 = vpack.c.bf16 %v558_v47, %v558_v47  ;;  %v2042_v47 = vld [vmem:[#allocation7 + $0x388] ss:$16 sps:$4 sm:$0xff]  }
 0x29b   :  { %1402 = vmatprep.mubr.bf16.mxu0 %v560_v48  ;;  %1484 = vmatprep.mubr.bf16.mxu1 %v560_v48  ;;  %v2047_v48 = vld [vmem:[#allocation7 + $0x3a4] ss:$16 sps:$4 sm:$0xff]  }
 0x29c   :  { %1403 = vmatmul.mubr.bf16.vlgmr.msra.gmra.mrb[8].mxu0 %v559_v51  ;;  %1485 = vmatmul.mubr.bf16.vlgmr.msra.gmra.mrb[8].mxu1 %v559_v51  ;;  %v2048_v51 = vld [vmem:[#allocation7 + $0x3a8] ss:$16 sps:$4 sm:$0xff]  }
 0x29d   :  { %1412 = vmatpush1.bf16.msra.mxu0 %v1967_v49  ;;  %1494 = vmatpush1.bf16.msra.mxu1 %v1970_v50  ;;  %v2050_v49 = vld [vmem:[#allocation7 + $0x3ac] ss:$16 sps:$4 sm:$0xff]   ;;  %v2045_v50 = vld [vmem:[#allocation7 + $0x3a0] ss:$16 sps:$4 sm:$0xff]  }
 0x29e   :  { %1443 = vmatprep.mubr.bf16.mxu0 %v562_v54  ;;  %1525 = vmatprep.mubr.bf16.mxu1 %v562_v54  ;;  %v2051_v54 = vld [vmem:[#allocation7 + $0x3c0] ss:$16 sps:$4 sm:$0xff]  }
 0x29f   :  { %1413 = vmatprep.subr.bf16.mxu0 %v1975_v52  ;;  %1495 = vmatprep.subr.bf16.mxu1 %v1978_v53  ;;  %v2053_v52 = vld [vmem:[#allocation7 + $0x3c4] ss:$16 sps:$4 sm:$0xff]   ;;  %v2056_v53 = vld [vmem:[#allocation7 + $0x3cc] ss:$16 sps:$4 sm:$0xff]  }
 0x2a1   :  { %1414 = vmatpush1.bf16.msra.mxu0 %v1973_v55  ;;  %1496 = vmatpush1.bf16.msra.mxu1 %v1976_v56  ;;  %v2054_v55 = vld [vmem:[#allocation7 + $0x3c8] ss:$16 sps:$4 sm:$0xff]   ;;  %v2059_v56 = vld [vmem:[#allocation7 + $0x3e4] ss:$16 sps:$4 sm:$0xff]  }
 0x2a2   :  { %1415 = vmatprep.subr.bf16.mxu0 %v1981_v57  ;;  %1497 = vmatprep.subr.bf16.mxu1 %v1984_v58  ;;  %v2076_v38 = vpop.eup %2075  ;;  %v2062_v57 = vld [vmem:[#allocation7 + $0x3ec] ss:$16 sps:$4 sm:$0xff]  }
 0x2a3   :  { %v545_v41 = vadd.f32 1.0, %v2076_v38 }
 0x2a5   :  { %1416 = vmatpush1.bf16.msra.mxu0 %v1979_v59  ;;  %1498 = vmatpush1.bf16.msra.mxu1 %v1982_v60  ;;  %2077 = vrcp.f32 %v545_v41  ;;  %v2057_v59 = vld [vmem:[#allocation7 + $0x3e0] ss:$16 sps:$4 sm:$0xff]   ;;  %v2060_v60 = vld [vmem:[#allocation7 + $0x3e8] ss:$16 sps:$4 sm:$0xff]  }
 0x2a6   :  { %1417 = vmatprep.subr.bf16.mxu0 %v1987_v61  ;;  %1499 = vmatprep.subr.bf16.mxu1 %v1990_v62 }
 0x2a9   :  { %1418 = vmatpush1.bf16.msra.mxu0 %v1985_v0  ;;  %1500 = vmatpush1.bf16.msra.mxu1 %v1988_v1  ;;  %v691_v0 = vld [vmem:[%s2354_s5] sm:$0xf]  ;;  %s2199_s5 = smov [#allocation8]  }
 0x2aa   :  { %1419 = vmatprep.subr.bf16.mxu0 %v1993_v2  ;;  %1501 = vmatprep.subr.bf16.mxu1 %v1996_v3  ;;  %v692_v1 = vunpack.c.l.bf16 %v691_v0  ;;  %s1572_s8 = sshll.u32 %s2199_s5, 4  ;;  %s1573_s8 = int_to_ptr.vmem [resolvable:$true] %s1572_s8 }
 0x2ab   :  { %s2161_s15 = scalar_lea.vmem %s1573_s8, 512  ;;  %p2166_p11 = scmp.lt.s32.totalorder %s1573_s8, %s1573_s8 }
 0x2ac   :  { %v697_v2 = vrot.slane %v692_v1, %v2294_v12  ;;  %v705_v3 = vrot.slane %v692_v1, %v263_v63  ;;  %v701_v4 = vrot.slane %v692_v1, %v259_v14  ;;  %p2162_p10 = scmp.ne.s32.totalorder %s1573_s8, %s2161_s15  ;;  %p2167_p12 = scmp.lt.s32.totalorder %s2161_s15, %s2161_s15 }
 0x2ad   :  { %1420 = vmatpush1.bf16.msra.mxu0 %v1991_v5  ;;  %1502 = vmatpush1.bf16.msra.mxu1 %v1994_v6  ;;  %v709_v5 = vrot.slane %v692_v1, %v267_v15 }
 0x2ae   :  { %1421 = vmatprep.subr.bf16.mxu0 %v1999_v7  ;;  %1503 = vmatprep.subr.bf16.mxu1 %v2002_v8  ;;  %v717_v6 = vrot.slane %v697_v2, %v2294_v12  ;;  %v725_v7 = vrot.slane %v705_v3, %v2294_v12  ;;  %v721_v8 = vrot.slane %v701_v4, %v2294_v12  ;;  %p2168_p13 = por %p2167_p12, %p2166_p11 }
 0x2af   :  { %v2078_v58 = vpop.eup %2077  ;;  %v729_v9 = vrot.slane %v709_v5, %v2294_v12 }
 0x2b0   :  { %v557_v61 = vmul.f32 %v2078_v58, %v2319_v13  ;;  %p2169_p0 = pnand %p2168_p13, %p2162_p10 }
 0x2b1   :  { %1422 = vmatpush1.bf16.msra.mxu0 %v1997_v11  ;;  %1504 = vmatpush1.bf16.msra.mxu1 %v2000_v16 }
 0x2b2   :  { %1423 = vmatprep.subr.bf16.mxu0 %v2005_v20  ;;  %1505 = vmatprep.subr.bf16.mxu1 %v2008_v17  ;;  %v561_v62 = vpack.c.bf16 %v557_v61, %v557_v61 }
 0x2b5   :  { %1424 = vmatpush1.bf16.msra.mxu0 %v2003_v18  ;;  %1506 = vmatpush1.bf16.msra.mxu1 %v2006_v19 }
 0x2b6   :  { %1425 = vmatprep.subr.bf16.mxu0 %v2011_v21  ;;  %1507 = vmatprep.subr.bf16.mxu1 %v2014_v22 }
 0x2b9   :  { %1426 = vmatpush1.bf16.msra.mxu0 %v2009_v25  ;;  %1508 = vmatpush1.bf16.msra.mxu1 %v2012_v26 }
 0x2ba   :  { %1427 = vmatprep.subr.bf16.mxu0 %v2017_v27  ;;  %1509 = vmatprep.subr.bf16.mxu1 %v2020_v28 }
 0x2bd   :  { %1428 = vmatpush1.bf16.msra.mxu0 %v2015_v23  ;;  %1510 = vmatpush1.bf16.msra.mxu1 %v2018_v29 }
 0x2be   :  { %1429 = vmatprep.subr.bf16.mxu0 %v2023_v30  ;;  %1511 = vmatprep.subr.bf16.mxu1 %v2026_v31 }
 0x2c1   :  { %1430 = vmatpush1.bf16.msra.mxu0 %v2021_v32  ;;  %1512 = vmatpush1.bf16.msra.mxu1 %v2024_v33 }
 0x2c2   :  { %1431 = vmatprep.subr.bf16.mxu0 %v2029_v34  ;;  %1513 = vmatprep.subr.bf16.mxu1 %v2032_v35 }
 0x2c5   :  { %1432 = vmatpush1.bf16.msra.mxu0 %v2027_v36  ;;  %1514 = vmatpush1.bf16.msra.mxu1 %v2030_v37 }
 0x2c6   :  { %1433 = vmatprep.subr.bf16.mxu0 %v2035_v39  ;;  %1515 = vmatprep.subr.bf16.mxu1 %v2038_v40 }
 0x2c9   :  { %1434 = vmatpush1.bf16.msra.mxu0 %v2033_v42  ;;  %1516 = vmatpush1.bf16.msra.mxu1 %v2036_v43 }
 0x2ca   :  { %1435 = vmatprep.subr.bf16.mxu0 %v2041_v44  ;;  %1517 = vmatprep.subr.bf16.mxu1 %v2044_v45 }
 0x2cd   :  { %1436 = vmatpush1.bf16.msra.mxu0 %v2039_v46  ;;  %1518 = vmatpush1.bf16.msra.mxu1 %v2042_v47 }
 0x2ce   :  { %1437 = vmatprep.subr.bf16.mxu0 %v2047_v48  ;;  %1519 = vmatprep.subr.bf16.mxu1 %v2050_v49 }
 0x2d1   :  { %1438 = vmatpush1.bf16.msra.mxu0 %v2045_v50  ;;  %1520 = vmatpush1.bf16.msra.mxu1 %v2048_v51 }
 0x2d2   :  { %1439 = vmatprep.subr.bf16.mxu0 %v2053_v52  ;;  %1521 = vmatprep.subr.bf16.mxu1 %v2056_v53 }
 0x2d5   :  { %1440 = vmatpush1.bf16.msra.mxu0 %v2051_v54  ;;  %1522 = vmatpush1.bf16.msra.mxu1 %v2054_v55 }
 0x2d6   :  { %1441 = vmatprep.subr.bf16.mxu0 %v2059_v56  ;;  %1523 = vmatprep.subr.bf16.mxu1 %v2062_v57 }
 0x2d9   :  { %1442 = vmatpush1.bf16.msra.mxu0 %v2057_v59  ;;  %1524 = vmatpush1.bf16.msra.mxu1 %v2060_v60 }
 0x2dc   :  { %1444 = vmatmul.mubr.bf16.vlgmr.msra.gmra.mrb[8].mxu0 %v561_v62  ;;  %1526 = vmatmul.mubr.bf16.vlgmr.msra.gmra.mrb[8].mxu1 %v561_v62 }
 0x3af   :  { %v1445_v11 = vpop.f32.mrb[8].mxu0  ;;  %v1527_v16 = vpop.f32.mrb[8].mxu1 }
 0x3b0   :  { %v1790_v20 = vadd.f32 %v1445_v11, %v717_v6  ;;  %v1792_v17 = vadd.f32 %v1527_v16, %v725_v7  ;;  %v1447_v13 = vpop.f32.mrb[9].mxu0  ;;  %v1529_v63 = vpop.f32.mrb[9].mxu1 }
 0x3b1   :  { %v1791_v18 = vadd.f32 %v1447_v13, %v721_v8  ;;  %v1793_v19 = vadd.f32 %v1529_v63, %v729_v9  ;;  %v1449_v14 = vpop.f32.mrb[10].mxu0  ;;  %v1531_v21 = vpop.f32.mrb[10].mxu1 }
 0x3b2   :  { %v1752_v10 = vmul.f32 -1.442695, %v1790_v20  ;;  %v1754_v15 = vmul.f32 -1.442695, %v1792_v17  ;;  %v1450_v22 = vpop.f32.mrb[11].mxu0  ;;  %v1532_v24 = vpop.f32.mrb[11].mxu1 }
 0x3b3   :  { %v1753_v25 = vmul.f32 -1.442695, %v1791_v18  ;;  %v1755_v26 = vmul.f32 -1.442695, %v1793_v19 }
 0x3b4   :  { %2079 = vpow2.f32 %v1752_v10 }
 0x3b5   :  { %2081 = vpow2.f32 %v1754_v15 }
 0x3b6   :  { %2083 = vpow2.f32 %v1753_v25 }
 0x3b7   :  { %2085 = vpow2.f32 %v1755_v26 }
 0x3be   :  { %v2080_v12 = vpop.eup %2079 }
 0x3bf   :  { %v2082_v27 = vpop.eup %2081  ;;  %v1546_v28 = vadd.f32 1.0, %v2080_v12 }
 0x3c0   :  { %v2084_v23 = vpop.eup %2083  ;;  %v1548_v29 = vadd.f32 1.0, %v2082_v27 }
 0x3c1   :  { %v2086_v30 = vpop.eup %2085  ;;  %2087 = vrcp.f32 %v1546_v28  ;;  %v1547_v31 = vadd.f32 1.0, %v2084_v23 }
 0x3c2   :  { %2089 = vrcp.f32 %v1548_v29  ;;  %v1549_v32 = vadd.f32 1.0, %v2086_v30 }
 0x3c3   :  { %2091 = vrcp.f32 %v1547_v31 }
 0x3c4   :  { %2093 = vrcp.f32 %v1549_v32 }
 0x3cb   :  { %v2088_v33 = vpop.eup %2087 }
 0x3cc   :  { %v2090_v34 = vpop.eup %2089  ;;  %v1558_v35 = vmul.f32 %v2088_v33, %v1790_v20 }
 0x3cd   :  { %v2092_v36 = vpop.eup %2091  ;;  %v1560_v37 = vmul.f32 %v2090_v34, %v1792_v17 }
 0x3ce   :  { %v2094_v38 = vpop.eup %2093  ;;  %1562 = vst [vmem:[#allocation8] sm:$0xff] %v1558_v35  ;;  %v1559_v39 = vmul.f32 %v2092_v36, %v1791_v18 }
 0x3cf   :  { %1564 = vst [vmem:[#allocation8 + $0x10] sm:$0xff] %v1560_v37  ;;  %v1561_v40 = vmul.f32 %v2094_v38, %v1793_v19 }
 0x3d0   :  { %1563 = vst [vmem:[#allocation8 + $0x8] sm:$0xff] %v1559_v39 }
 0x3d1   :  { %1565 = vst [vmem:[#allocation8 + $0x18] sm:$0xff] %v1561_v40 }
 0x3d2   :  { %2172 = shalt.err (!%p2169_p0)
}
 0x3d3   :  { %s2173_s18 = scalar_lea.hbm %s2355_s6, 512 }
 0x3d4   :  { %p2174_p1 = scmp.ne.s32.totalorder %s2355_s6, %s2173_s18  ;;  %p2177_p2 = scmp.lt.u32.totalorder %s2173_s18, %s2355_s6 }
 0x3d6   :  { %p2179_p3 = pnand %p2177_p2, %p2174_p1 }
 0x3d8   :  { %2182 = shalt.err (!%p2179_p3)
}
 0x3d9   :  { %1575 = dma.vmem_to_hbm [thread:$0]  %s1573_s8, 512, %s2355_s6, [#allocation4]  }
 0x3da   :  { %2187 = dma.done.wait [#allocation4], 512  }
 0x3db   :  { %2188 = vsyncadd [#allocation4], 4294966784 }
 0x3dc   :  { %1579 = vsyncpa [#allocation3], 1 }
 0x3dd   :  { %1580 = vsyncpa [#allocation6], 1 }
 0x3de   :  { %1581 = vsyncpa [#allocation4], 1 }

</bundles_post_ra>
